<compile_context>
chip_gen: v7x
topology: tpu7x:2x2x1
jax: 0.10.0
libtpu: 0.0.40
codegen_flags: <defaults>
</compile_context>

<pallas_src>
import jax
import jax.numpy as jnp
from jax.experimental import pallas as pl
from jax.experimental.pallas import tpu as pltpu


# ---------------------------------------------------------------------------
# Kernel: one (TH, W) output tile = im2col + single MXU dot + bias + SiLU
# ---------------------------------------------------------------------------
def _repconv_block_kernel(bulk_ref, halo_ref, w_ref, b_ref, o_ref):
    # bulk_ref: (TH, Wp, Cin)   padded rows [y*TH, y*TH+TH)        (channels-last)
    # halo_ref: (2,  Wp, Cin)   padded rows [y*TH+TH, y*TH+TH+2)   (bottom halo)
    # w_ref   : (9*Cin, Cout)   fused 3x3 weight, K index = (kh*3 + kw)*Cin + cin
    # b_ref   : (1, Cout)       fused bias (f32)
    # o_ref   : (TH, W, Cout)   output rows [y*TH, y*TH+TH)
    th, w_out, c_out = o_ref.shape
    cin = bulk_ref.shape[-1]

    # (TH+2, Wp, Cin) input window for this row block (leading-dim concat).
    win = jnp.concatenate([bulk_ref[...], halo_ref[...]], axis=0)

    # im2col: gather the 9 shifted taps once, channels-last, tap-major order
    # matching the weight layout.  One deep contraction replaces 9 shallow dots.
    taps = []
    for kh in range(3):
        rows = win[kh:kh + th]                       # (TH, Wp, Cin) leading slice
        for kw in range(3):
            taps.append(rows[:, kw:kw + w_out, :])   # (TH, W, Cin)
    patches = jnp.concatenate(taps, axis=-1)         # (TH, W, 9*Cin)
    patches = patches.reshape(th * w_out, 9 * cin)   # MXU operand, M = TH*W

    acc = jnp.dot(patches, w_ref[...],
                  preferred_element_type=jnp.float32)  # (TH*W, Cout) f32
    y = acc + b_ref[...]                               # bias (1, Cout) broadcast
    y = y * jax.nn.sigmoid(y)                          # SiLU, f32 epilogue
    o_ref[...] = y.reshape(th, w_out, c_out).astype(o_ref.dtype)


# ---------------------------------------------------------------------------
# Host-side re-parameterisation (exact): BN fold + 1x1 -> 3x3 centre tap
# ---------------------------------------------------------------------------
def _fuse_branches(w3, gamma1, beta1, mean1, var1,
                   w1, gamma2, beta2, mean2, var2, eps):
    s1 = gamma1 / jnp.sqrt(var1 + eps)
    s2 = gamma2 / jnp.sqrt(var2 + eps)
    w3_f = w3 * s1[:, None, None, None]
    w1_f = w1 * s2[:, None, None, None]
    w_eq = w3_f.at[:, :, 1, 1].add(w1_f[:, :, 0, 0])        # (C2, C1, 3, 3)
    bias = (beta1 - mean1 * s1) + (beta2 - mean2 * s2)       # (C2,)
    return w_eq, bias


def _pick_block_h(h, w, c_in, itemsize, vmem_target_bytes=4 << 20):
    """Rows per grid step: large enough to amortise per-step cost and fill the
    MXU (M = TH*W), small enough that the in-kernel im2col operand stays a few
    MiB (fits v5e's 16 MiB scoped / v7x's 64 MiB VMEM comfortably)."""
    row_bytes = max(1, w * 9 * c_in * itemsize)
    th = min(32, max(2, vmem_target_bytes // row_bytes))
    th = min(th, h + (h % 2))          # no point blocking beyond the image
    th = max(2, th - (th % 2))         # even (the halo spec uses 2-row blocks)
    return int(th)


# ---------------------------------------------------------------------------
# Channels-last core (preferred entry point inside an NHWC network)
# ---------------------------------------------------------------------------
def repconv_forward_nhwc(x, w3, gamma1, beta1, mean1, var1,
                         w1, gamma2, beta2, mean2, var2,
                         *, eps=1e-5, block_h=None, compute_dtype=None):
    """Fused RepConv forward. x: (B, H, W, C1) -> (B, H, W, C2)."""
    B, H, W, C_in = x.shape
    C_out = w3.shape[0]
    cdt = jnp.dtype(compute_dtype) if compute_dtype is not None else x.dtype

    w_eq, bias = _fuse_branches(w3, gamma1, beta1, mean1, var1,
                                w1, gamma2, beta2, mean2, var2, eps)
    # K layout (kh, kw, cin) major-to-minor, matching the kernel's im2col concat.
    w9 = jnp.transpose(w_eq, (2, 3, 1, 0)).reshape(9 * C_in, C_out).astype(cdt)
    bias2d = bias.reshape(1, C_out).astype(jnp.float32)

    if block_h is None:
        th = _pick_block_h(H, W, C_in, jnp.dtype(cdt).itemsize)
    else:
        th = int(block_h)
        if th < 2 or th % 2:
            raise ValueError("block_h must be an even integer >= 2")
    n_h = pl.cdiv(H, th)
    Hc = n_h * th
    Wp = W + 2

    # Zero pad: 1 row halo top, (Hc - H + 1) rows bottom (halo + row-block fill),
    # 1 column halo left/right.
    x_pad = jnp.pad(x.astype(cdt), ((0, 0), (1, Hc - H + 1), (1, 1), (0, 0)))

    # Per-step VMEM estimate -> only raise the scoped limit when actually needed.
    in_it = jnp.dtype(cdt).itemsize
    blk_in = (th + 2) * Wp * C_in * in_it
    blk_out = th * W * C_out * jnp.dtype(x.dtype).itemsize
    w_bytes = 9 * C_in * C_out * in_it + C_out * 4
    tmp = blk_in + th * W * 9 * C_in * in_it + th * W * C_out * 4
    est = 2 * (blk_in + blk_out + w_bytes) + tmp
    vmem_limit = None if est <= (16 << 20) else min(int(1.5 * est), 64 << 20)

    out = pl.pallas_call(
        _repconv_block_kernel,
        out_shape=jax.ShapeDtypeStruct((B, Hc, W, C_out), x.dtype),
        grid_spec=pltpu.PrefetchScalarGridSpec(
            num_scalar_prefetch=0,
            grid=(B, n_h),
            in_specs=[
                # bulk: TH padded rows per step, each row fetched exactly once
                pl.BlockSpec((None, th, Wp, C_in), lambda b, y: (b, y, 0, 0)),
                # halo: 2 padded rows below the bulk -> (TH+2)/TH input traffic
                pl.BlockSpec((None, 2, Wp, C_in),
                             lambda b, y: (b, (y + 1) * (th // 2), 0, 0)),
                # fused weight / bias: constant index maps -> VMEM resident
                pl.BlockSpec((9 * C_in, C_out), lambda b, y: (0, 0)),
                pl.BlockSpec((1, C_out), lambda b, y: (0, 0)),
            ],
            out_specs=pl.BlockSpec((None, th, W, C_out), lambda b, y: (b, y, 0, 0)),
        ),
        compiler_params=pltpu.CompilerParams(
            dimension_semantics=("parallel", "parallel"),
            vmem_limit_bytes=vmem_limit),
    )(x_pad, x_pad, w9, bias2d)

    return out if Hc == H else out[:, :H]


# ---------------------------------------------------------------------------
# NCHW convenience wrapper (matches the PyTorch module's layout)
# ---------------------------------------------------------------------------
def repconv_forward(x, w3, gamma1, beta1, mean1, var1,
                    w1, gamma2, beta2, mean2, var2,
                    *, eps=1e-5, block_h=None, compute_dtype=None):
    """RepConv forward (k=3, s=1, p=1, g=1, bn=False, act=SiLU) on NCHW input.

    Prefer `repconv_forward_nhwc` inside an NHWC network to avoid the two
    layout transposes done here purely for PyTorch compatibility.
    """
    x_nhwc = jnp.transpose(x, (0, 2, 3, 1))
    y = repconv_forward_nhwc(x_nhwc, w3, gamma1, beta1, mean1, var1,
                             w1, gamma2, beta2, mean2, var2,
                             eps=eps, block_h=block_h, compute_dtype=compute_dtype)
    return jnp.transpose(y, (0, 3, 1, 2))


# ---------------------------------------------------------------------------
# Pure-JAX un-fused reference: BN1(conv3x3) + BN2(conv1x1), SiLU
# ---------------------------------------------------------------------------
def _reference(x, w3, gamma1, beta1, mean1, var1,
               w1, gamma2, beta2, mean2, var2, eps=1e-5):
    B, C_in, H, W = x.shape
    C_out = w3.shape[0]
    xpad = jnp.pad(x, ((0, 0), (0, 0), (1, 1), (1, 1)))
    y3 = jnp.zeros((B, C_out, H, W), jnp.float32)
    for kh in range(3):
        for kw in range(3):
            y3 = y3 + jnp.einsum(
                "bchw,oc->bohw",
                xpad[:, :, kh:kh + H, kw:kw + W], w3[:, :, kh, kw],
                precision=jax.lax.Precision.HIGHEST)
    y1 = jnp.einsum("bchw,oc->bohw", x, w1[:, :, 0, 0],
                    precision=jax.lax.Precision.HIGHEST)

    def bn(y, gamma, beta, mean, var):
        inv = gamma / jnp.sqrt(var + eps)
        return (y * inv[None, :, None, None]
                + (beta - mean * inv)[None, :, None, None])

    y = bn(y3, gamma1, beta1, mean1, var1) + bn(y1, gamma2, beta2, mean2, var2)
    return y * jax.nn.sigmoid(y)


if __name__ == "__main__":
    B, C, H, W = 2, 4, 16, 16

    key = jax.random.PRNGKey(0)
    ks = jax.random.split(key, 13)
    x = jax.random.normal(ks[0], (B, C, H, W), dtype=jnp.float32)
    w3 = 0.1 * jax.random.normal(ks[1], (C, C, 3, 3), dtype=jnp.float32)
    w1 = 0.1 * jax.random.normal(ks[2], (C, C, 1, 1), dtype=jnp.float32)
    gamma1 = 1.0 + 0.1 * jax.random.normal(ks[3], (C,), dtype=jnp.float32)
    beta1 = 0.1 * jax.random.normal(ks[4], (C,), dtype=jnp.float32)
    mean1 = 0.1 * jax.random.normal(ks[5], (C,), dtype=jnp.float32)
    var1 = jax.random.uniform(ks[6], (C,), jnp.float32, 0.5, 1.5)
    gamma2 = 1.0 + 0.1 * jax.random.normal(ks[7], (C,), dtype=jnp.float32)
    beta2 = 0.1 * jax.random.normal(ks[8], (C,), dtype=jnp.float32)
    mean2 = 0.1 * jax.random.normal(ks[9], (C,), dtype=jnp.float32)
    var2 = jax.random.uniform(ks[10], (C,), jnp.float32, 0.5, 1.5)

    # Case 1: multi row-block path (block_h=8 -> grid (2, 2), halo stitching).
    y = repconv_forward(x, w3, gamma1, beta1, mean1, var1,
                        w1, gamma2, beta2, mean2, var2, block_h=8)
    jax.block_until_ready(y)
    y_ref = _reference(x, w3, gamma1, beta1, mean1, var1,
                       w1, gamma2, beta2, mean2, var2)
    assert y.shape == (B, C, H, W)
    # Tolerance accommodates the MXU's default-precision f32 matmul path
    # (operands may be evaluated in bf16 passes); typical error is far smaller.
    assert jnp.allclose(y, y_ref, atol=1e-2, rtol=1e-2), \
        float(jnp.max(jnp.abs(y - y_ref)))

    # Case 2: H not a multiple of block_h (bottom zero-fill + crop path).
    x2 = jax.random.normal(ks[11], (1, C, 10, 8), dtype=jnp.float32)
    y2 = repconv_forward(x2, w3, gamma1, beta1, mean1, var1,
                         w1, gamma2, beta2, mean2, var2, block_h=4)
    jax.block_until_ready(y2)
    y2_ref = _reference(x2, w3, gamma1, beta1, mean1, var1,
                        w1, gamma2, beta2, mean2, var2)
    assert y2.shape == (1, C, 10, 8)
    assert jnp.allclose(y2, y2_ref, atol=1e-2, rtol=1e-2), \
        float(jnp.max(jnp.abs(y2 - y2_ref)))

    print("KERNEL_OK")
</pallas_src>

<mosaic_0001>
module attributes {stable_mosaic.version = 11 : i64} {
  func.func @_repconv_block_kernel(%arg0: i32, %arg1: i32, %arg2: memref<1x8x18x4xf32, #tpu.memory_space<vmem>>, %arg3: memref<1x2x18x4xf32, #tpu.memory_space<vmem>>, %arg4: memref<36x4xf32, #tpu.memory_space<vmem>>, %arg5: memref<1x4xf32, #tpu.memory_space<vmem>>, %arg6: memref<1x8x16x4xf32, #tpu.memory_space<vmem>>) attributes {dimension_semantics = [#tpu.dimension_semantics<parallel>, #tpu.dimension_semantics<parallel>], iteration_bounds = array<i64: 2, 2>, scalar_prefetch = 0 : i64, scratch_operands = 0 : i64, tpu.core_type = #tpu.core_type<tc>, window_params = [{transform_indices = @transform_0, window_bounds = array<i64: 1, 8, 18, 4>}, {transform_indices = @transform_1, window_bounds = array<i64: 1, 2, 18, 4>}, {pipeline_mode = #tpu.pipeline_mode<synchronous>, transform_indices = @transform_2, window_bounds = array<i64: 36, 4>}, {pipeline_mode = #tpu.pipeline_mode<synchronous>, transform_indices = @transform_3, window_bounds = array<i64: 1, 4>}, {transform_indices = @transform_4, window_bounds = array<i64: 1, 8, 16, 4>}]} {
    %c0 = arith.constant 0 : index
    %c0_0 = arith.constant 0 : index
    %c0_1 = arith.constant 0 : index
    %c0_2 = arith.constant 0 : index
    %0 = vector.load %arg2[%c0, %c0_0, %c0_1, %c0_2] : memref<1x8x18x4xf32, #tpu.memory_space<vmem>>, vector<1x8x18x4xf32>
    %1 = vector.shape_cast %0 : vector<1x8x18x4xf32> to vector<8x18x4xf32>
    %c0_3 = arith.constant 0 : index
    %c0_4 = arith.constant 0 : index
    %c0_5 = arith.constant 0 : index
    %c0_6 = arith.constant 0 : index
    %2 = vector.load %arg3[%c0_3, %c0_4, %c0_5, %c0_6] : memref<1x2x18x4xf32, #tpu.memory_space<vmem>>, vector<1x2x18x4xf32>
    %3 = vector.shape_cast %2 : vector<1x2x18x4xf32> to vector<2x18x4xf32>
    %4 = tpu.concatenate %1, %3 in 0 : vector<8x18x4xf32>, vector<2x18x4xf32> -> vector<10x18x4xf32>
    %5 = vector.extract_strided_slice %4 {offsets = [0, 0, 0], sizes = [8, 18, 4], strides = [1, 1, 1]} : vector<10x18x4xf32> to vector<8x18x4xf32>
    %6 = vector.extract_strided_slice %5 {offsets = [0, 0, 0], sizes = [8, 16, 4], strides = [1, 1, 1]} : vector<8x18x4xf32> to vector<8x16x4xf32>
    %7 = vector.extract_strided_slice %5 {offsets = [0, 1, 0], sizes = [8, 16, 4], strides = [1, 1, 1]} : vector<8x18x4xf32> to vector<8x16x4xf32>
    %8 = vector.extract_strided_slice %5 {offsets = [0, 2, 0], sizes = [8, 16, 4], strides = [1, 1, 1]} : vector<8x18x4xf32> to vector<8x16x4xf32>
    %9 = vector.extract_strided_slice %4 {offsets = [1, 0, 0], sizes = [8, 18, 4], strides = [1, 1, 1]} : vector<10x18x4xf32> to vector<8x18x4xf32>
    %10 = vector.extract_strided_slice %9 {offsets = [0, 0, 0], sizes = [8, 16, 4], strides = [1, 1, 1]} : vector<8x18x4xf32> to vector<8x16x4xf32>
    %11 = vector.extract_strided_slice %9 {offsets = [0, 1, 0], sizes = [8, 16, 4], strides = [1, 1, 1]} : vector<8x18x4xf32> to vector<8x16x4xf32>
    %12 = vector.extract_strided_slice %9 {offsets = [0, 2, 0], sizes = [8, 16, 4], strides = [1, 1, 1]} : vector<8x18x4xf32> to vector<8x16x4xf32>
    %13 = vector.extract_strided_slice %4 {offsets = [2, 0, 0], sizes = [8, 18, 4], strides = [1, 1, 1]} : vector<10x18x4xf32> to vector<8x18x4xf32>
    %14 = vector.extract_strided_slice %13 {offsets = [0, 0, 0], sizes = [8, 16, 4], strides = [1, 1, 1]} : vector<8x18x4xf32> to vector<8x16x4xf32>
    %15 = vector.extract_strided_slice %13 {offsets = [0, 1, 0], sizes = [8, 16, 4], strides = [1, 1, 1]} : vector<8x18x4xf32> to vector<8x16x4xf32>
    %16 = vector.extract_strided_slice %13 {offsets = [0, 2, 0], sizes = [8, 16, 4], strides = [1, 1, 1]} : vector<8x18x4xf32> to vector<8x16x4xf32>
    %17 = tpu.concatenate %6, %7, %8, %10, %11, %12, %14, %15, %16 in 2 : vector<8x16x4xf32>, vector<8x16x4xf32>, vector<8x16x4xf32>, vector<8x16x4xf32>, vector<8x16x4xf32>, vector<8x16x4xf32>, vector<8x16x4xf32>, vector<8x16x4xf32>, vector<8x16x4xf32> -> vector<8x16x36xf32>
    %18 = vector.shape_cast %17 : vector<8x16x36xf32> to vector<128x36xf32>
    %c0_7 = arith.constant 0 : index
    %c0_8 = arith.constant 0 : index
    %19 = vector.load %arg4[%c0_7, %c0_8] : memref<36x4xf32, #tpu.memory_space<vmem>>, vector<36x4xf32>
    %cst = arith.constant dense<0.000000e+00> : vector<128x4xf32>
    %20 = tpu.matmul %18, %19, %cst {dimension_numbers = #tpu.dot_dimension_numbers<[1], [0], [0], [1], [0, 0, 1, 1], [], []>} : vector<128x36xf32>, vector<36x4xf32>, vector<128x4xf32> -> vector<128x4xf32>
    %c0_9 = arith.constant 0 : index
    %c0_10 = arith.constant 0 : index
    %21 = vector.load %arg5[%c0_9, %c0_10] : memref<1x4xf32, #tpu.memory_space<vmem>>, vector<1x4xf32>
    %22 = vector.broadcast %21 : vector<1x4xf32> to vector<128x4xf32>
    %23 = arith.addf %20, %22 : vector<128x4xf32>
    %24 = arith.negf %23 : vector<128x4xf32>
    %25 = math.exp %24 : vector<128x4xf32>
    %cst_11 = arith.constant 1.000000e+00 : f32
    %26 = vector.broadcast %cst_11 : f32 to vector<128x4xf32>
    %27 = arith.addf %26, %25 : vector<128x4xf32>
    %28 = arith.divf %26, %27 : vector<128x4xf32>
    %29 = arith.mulf %23, %28 : vector<128x4xf32>
    %30 = vector.shape_cast %29 : vector<128x4xf32> to vector<8x16x4xf32>
    %c0_12 = arith.constant 0 : index
    %c0_13 = arith.constant 0 : index
    %c0_14 = arith.constant 0 : index
    %c0_15 = arith.constant 0 : index
    %31 = vector.load %arg6[%c0_12, %c0_13, %c0_14, %c0_15] : memref<1x8x16x4xf32, #tpu.memory_space<vmem>>, vector<1x8x16x4xf32>
    %32 = vector.shape_cast %31 : vector<1x8x16x4xf32> to vector<8x16x4xf32>
    %33 = vector.shape_cast %30 : vector<8x16x4xf32> to vector<1x8x16x4xf32>
    tpu.vector_store %arg6[%c0_12, %c0_13, %c0_14, %c0_15], %33 {strides = array<i32>} : memref<1x8x16x4xf32, #tpu.memory_space<vmem>>, vector<1x8x16x4xf32>,
    return
  }
  func.func @transform_0(%arg0: i32, %arg1: i32) -> (i32, i32, i32, i32) {
    %c0_i32 = arith.constant 0 : i32
    %c0_i32_0 = arith.constant 0 : i32
    %c0_i32_1 = arith.constant 0 : i32
    return %arg0, %arg1, %c0_i32, %c0_i32_0 : i32, i32, i32, i32
  }
  func.func @transform_1(%arg0: i32, %arg1: i32) -> (i32, i32, i32, i32) {
    %c1_i32 = arith.constant 1 : i32
    %0 = arith.addi %arg1, %c1_i32 : i32
    %c4_i32 = arith.constant 4 : i32
    %1 = arith.muli %0, %c4_i32 : i32
    %c0_i32 = arith.constant 0 : i32
    %c0_i32_0 = arith.constant 0 : i32
    %c0_i32_1 = arith.constant 0 : i32
    return %arg0, %1, %c0_i32, %c0_i32_0 : i32, i32, i32, i32
  }
  func.func @transform_2(%arg0: i32, %arg1: i32) -> (i32, i32) {
    %c0_i32 = arith.constant 0 : i32
    %c0_i32_0 = arith.constant 0 : i32
    %c0_i32_1 = arith.constant 0 : i32
    return %c0_i32, %c0_i32_0 : i32, i32
  }
  func.func @transform_3(%arg0: i32, %arg1: i32) -> (i32, i32) {
    %c0_i32 = arith.constant 0 : i32
    %c0_i32_0 = arith.constant 0 : i32
    %c0_i32_1 = arith.constant 0 : i32
    return %c0_i32, %c0_i32_0 : i32, i32
  }
  func.func @transform_4(%arg0: i32, %arg1: i32) -> (i32, i32, i32, i32) {
    %c0_i32 = arith.constant 0 : i32
    %c0_i32_0 = arith.constant 0 : i32
    %c0_i32_1 = arith.constant 0 : i32
    return %arg0, %arg1, %c0_i32, %c0_i32_0 : i32, i32, i32, i32
  }
}

</mosaic_0001>

<bundles_post_ra>
// kernel: tpu_custom_call.1
= control target key start
LH: loop header
LB: loop body
LE: loop exit
PB: predicated region body
PF: predicated region fallthrough
CT: control target
= control target key end

     0   :  { %s1778_s15 = smov 0   ;;  %s1780_s16 = smov 0   ;;  %s2553_s0 = inlined_call_operand.vmem [shape: f32[2,18,18,4], index: 0, kind: input, shape index: {}]   ;;  %s2554_s1 = inlined_call_operand.vmem [shape: f32[2,18,18,4], index: 1, kind: input, shape index: {}]   ;;  %s2555_s2 = inlined_call_operand.vmem [shape: f32[36,4], index: 2, kind: input, shape index: {}]   ;;  %s2556_s3 = inlined_call_operand.vmem [shape: f32[1,4], index: 3, kind: input, shape index: {}]   ;;  %s2557_s4 = inlined_call_operand.vmem [shape: f32[2,16,16,4], index: 4, kind: output, shape index: {}]  }
   0x1   :  { %s1782_s17 = smov 0   ;;  %s1784_s18 = smov 0  }
   0x2   :  { %s1786_s19 = smov 0  }
   0x3 LB: > { %s23_s20 = sadd.s32 1, %s1735_s17  ;;  %s26_s21 = sadd.s32 1, %s1739_s18  ;;  %s1743_s19 = sphi %s1786_s19, %s14_s19   ;;  %s1739_s18 = sphi %s1784_s18, %s2588_s18   ;;  %s1735_s17 = sphi %s1782_s17, %s2587_s17   ;;  %s1731_s16 = sphi %s1780_s16, %s2586_s16   ;;  %s1727_s15 = sphi %s1778_s15, %s2585_s15  }
   0x4   : > { %p24_p0 = scmp.ge.s32.totalorder %s23_s20, 2  ;;  %p1466_p1 = scmp.ge.s32.totalorder %s1743_s19, 1 }
   0x5   : > { %p220_p2 = scmp.lt.s32.totalorder %s1743_s19, 5 }
   0x6   : > { %s2590_s20 = smov (%p24_p0, %s23_s20), 0  ;;  %s2592_s21 = smov (!%p24_p0, %s26_s21), %s1739_s18 }
   0x7   : > { %p221_p3 = pnand %p1466_p1, %p220_p2  ;;  %p28_p4 = scmp.ge.s32.totalorder %s2592_s21, 2 }
   0x9   : > { %s2594_s21 = smov (%p28_p4, %s2592_s21), 0  ;;  %224 = sbr.rel (%p221_p3) target bundleno = 645 (0x285), region = 36 }
  0x10   : > { %s1808_s22 = sshll.u32 %s1727_s15, 3  ;;  %p279_p5 = scmp.lt.s32.totalorder %s1731_s16, 1  ;;  %vm374_vm0 = vcmask 1046528   ;;  %vm463_vm1 = vcmask 1045504   ;;  %vm1063_vm2 = vcmask 1043456   ;;  %vm866_vm3 = vcmask 31744  }
  0x11   : > { %p281_p6 = scmp.lt.s32.totalorder %s1808_s22, 17  ;;  %s1745_s5 = smov 4   ;;  %vm883_vm4 = vcmask 64512   ;;  %vm900_vm5 = vcmask 97280   ;;  %vm917_vm6 = vcmask 130048   ;;  %vm934_vm7 = vcmask 162816  }
  0x12   : > { %s2596_s16 = smov (!%p279_p5, %s1731_s16), 1  ;;  %s1746_s6 = smov 8   ;;  %vm951_vm8 = vcmask 195584   ;;  %vm968_vm9 = vcmask 228352   ;;  %vm985_vm10 = vcmask 261120   ;;  %vm1014_vm11 = vcmask 293888  }
  0x13   : > { %s282_s23 = scalar_select %p281_p6, %s1808_s22, 17 }
  0x14   : > { %s1591_s24 = smul.u32 54, %s2596_s16  ;;  %s1747_s7 = smov 12  }
  0x15   : > { %s1590_s25 = smul.u32 3, %s282_s23  ;;  %s1748_s8 = smov 16  }
  0x16   : > { %s1749_s9 = smov 20   ;;  %s1750_s10 = smov 24  }
  0x17   : > { %s285_s26 = sadd.s32 %s1591_s24, %s1590_s25  ;;  %s1751_s11 = smov 28  }
  0x18   : > { %s1468_s27 = sshll.u32 %s285_s26, 3  ;;  %s1752_s28 = smov 32  }
  0x19   : > { %s1820_s30 = scalar_lea.vmem %s2553_s0, %s1468_s27  ;;  %p312_p8 = scmp.lt.s32.totalorder %s1808_s22, 15 }
  0x1a   : > { %v1823_v0 = vld [vmem:[%s1820_s30 + $0x8] sm:$0xff]  ;;  %v322_v1 = vld [vmem:[%s1820_s30 + $0x10] sm:$0x3]  ;;  %v1827_v2 = vld [vmem:[%s1820_s30] sm:$0xff] }
  0x1b   : > { %v376_v3 = vrot.slane %v1823_v0, 1  ;;  %v378_v4 = vrot.slane %v322_v1, 1  ;;  %v375_v5 = vrot.slane %v1827_v2, 1  ;;  %v1832_v6 = vld [vmem:[%s1820_s30 + $0x68] sm:$0xff]  ;;  %v334_v7 = vld [vmem:[%s1820_s30 + $0x70] sm:$0x3] }
  0x1c   : > { %v396_v8 = vrot.slane %v1832_v6, 1  ;;  %v398_v9 = vrot.slane %v334_v7, 1  ;;  %v1837_v10 = vld [vmem:[%s1820_s30 + $0x60] sm:$0xff]  ;;  %v485_v14 = vrot.slane %v1832_v6, 2  ;;  %v464_v15 = vrot.slane %v1827_v2, 2  ;;  %v1873_v26 = vld [vmem:[%s1820_s30 + $0x78] sm:$0xff] }
  0x1d   : > { %v379_v11 = vsel %vm374_vm0, %v376_v3, %v378_v4  ;;  %v377_v12 = vsel %vm374_vm0, %v375_v5, %v376_v3  ;;  %v395_v13 = vrot.slane %v1837_v10, 1  ;;  %v484_v18 = vrot.slane %v1837_v10, 2  ;;  %v1876_v27 = vld [vmem:[%s1820_s30 + $0x18] sm:$0xff]  ;;  %v1879_v28 = vld [vmem:[%s1820_s30 + $0x80] sm:$0xff]  ;;  %v337_v36 = vld [vmem:[%s1820_s30 + $0x88] sm:$0x3] }
  0x1e   : > { %417 = vrot.lane.b32.xlu1 %v379_v11, %s1745_s5  ;;  %415 = vrot.lane.b32.xlu0 %v377_v12, %s1745_s5  ;;  %v1847_v16 = vsel %vm374_vm0, %v396_v8, %v398_v9  ;;  %v465_v19 = vrot.slane %v1823_v0, 2  ;;  %v487_v22 = vrot.slane %v334_v7, 2  ;;  %v467_v23 = vrot.slane %v322_v1, 2  ;;  %v1882_v29 = vld [vmem:[%s1820_s30 + $0x20] sm:$0xff]  ;;  %v325_v37 = vld [vmem:[%s1820_s30 + $0x28] sm:$0x3] }
  0x1f   : > { %v1850_v17 = vsel %vm374_vm0, %v395_v13, %v396_v8  ;;  %v1859_v20 = vsel %vm463_vm1, %v484_v18, %v485_v14  ;;  %v400_v30 = vrot.slane %v1873_v26, 1  ;;  %v401_v31 = vrot.slane %v1879_v28, 1  ;;  %v1940_v52 = vld [vmem:[%s1820_s30 + $0x90] sm:$0xff]  ;;  %v1953_v54 = vld [vmem:[%s1820_s30 + $0x98] sm:$0xff]  ;;  %v340_v62 = vld [vmem:[%s1820_s30 + $0xa0] sm:$0x3] }
  0x20   : > { %v466_v21 = vsel %vm463_vm1, %v464_v15, %v465_v19  ;;  %v1866_v24 = vsel %vm463_vm1, %v485_v14, %v487_v22  ;;  %v468_v25 = vsel %vm463_vm1, %v465_v19, %v467_v23  ;;  %v380_v32 = vrot.slane %v1876_v27, 1  ;;  %v1943_v53 = vld [vmem:[%s1820_s30 + $0x30] sm:$0xff]  ;;  %v1956_v55 = vld [vmem:[%s1820_s30 + $0x38] sm:$0xff]  ;;  %v328_v63 = vld [vmem:[%s1820_s30 + $0x40] sm:$0x3] }
  0x21   : > { %v381_v33 = vrot.slane %v1882_v29, 1  ;;  %v1897_v34 = vsel %vm374_vm0, %v400_v30, %v401_v31  ;;  %v403_v38 = vrot.slane %v337_v36, 1  ;;  %v383_v39 = vrot.slane %v325_v37, 1  ;;  %2571 = vst [vmem:[#allocation6_spill] sm:$0xff] %v1956_v55  ;;  %v1002_v8 = vld [vmem:[%s2555_s2] sm:$0xff]  ;;  %v1003_v9 = vld [vmem:[%s2555_s2 + $0x8] sm:$0xff] }
  0x22   : > { %433 = vrot.lane.b32.xlu1 %v1847_v16, %s1745_s5  ;;  %431 = vrot.lane.b32.xlu0 %v1850_v17, %s1745_s5  ;;  %2567 = vst [vmem:[#allocation2_spill] sm:$0xff] %v1897_v34  ;;  %v489_v40 = vrot.slane %v1873_v26, 2  ;;  %v490_v41 = vrot.slane %v1879_v28, 2  ;;  %v469_v44 = vrot.slane %v1876_v27, 2  ;;  %v470_v45 = vrot.slane %v1882_v29, 2  ;;  %v1004_v15 = vld [vmem:[%s2555_s2 + $0x10] sm:$0xff] }
  0x23   : > { %v382_v35 = vsel %vm374_vm0, %v380_v32, %v381_v33  ;;  %v1911_v42 = vsel %vm374_vm0, %v401_v31, %v403_v38  ;;  %v384_v43 = vsel %vm374_vm0, %v381_v33, %v383_v39  ;;  %v492_v48 = vrot.slane %v337_v36, 2  ;;  %v1005_v18 = vld [vmem:[%s2555_s2 + $0x18] sm:$0xff]  ;;  %v1006_v23 = vld [vmem:[%s2555_s2 + $0x20] sm:$0xf]  ;;  %v2026_v33 = vld [vmem:[%s1820_s30 + $0xa8] sm:$0xff] }
  0x24   : > { %2568 = vst [vmem:[#allocation3_spill] sm:$0xff] %v1911_v42  ;;  %v1920_v46 = vsel %vm463_vm1, %v489_v40, %v490_v41  ;;  %v471_v47 = vsel %vm463_vm1, %v469_v44, %v470_v45  ;;  %v472_v49 = vrot.slane %v325_v37, 2  ;;  %v405_v56 = vrot.slane %v1940_v52, 1  ;;  %2572 = vst [vmem:[#allocation7_spill] sm:$0xff] %v2026_v33  ;;  %v2053_v44 = vld [vmem:[%s1820_s30 + $0x50] sm:$0xff] }
  0x25   : > { %2569 = vst [vmem:[#allocation4_spill] sm:$0xff] %v1920_v46  ;;  %v1933_v50 = vsel %vm463_vm1, %v490_v41, %v492_v48  ;;  %v406_v57 = vrot.slane %v1953_v54, 1  ;;  %v385_v58 = vrot.slane %v1943_v53, 1  ;;  %v386_v59 = vrot.slane %v1956_v55, 1  ;;  %2575 = vst [vmem:[#allocation10_spill] sm:$0xff] %v2053_v44 }
  0x26   : > { %520 = vrot.lane.b32.xlu1 %v1859_v20, %s1746_s6  ;;  %504 = vrot.lane.b32.xlu0 %v466_v21, %s1746_s6  ;;  %2570 = vst [vmem:[#allocation5_spill] sm:$0xff] %v1933_v50  ;;  %v473_v51 = vsel %vm463_vm1, %v470_v45, %v472_v49  ;;  %v408_v1 = vrot.slane %v340_v62, 1  ;;  %v388_v3 = vrot.slane %v328_v63, 1  ;;  %v494_v4 = vrot.slane %v1940_v52, 2 }
  0x27   : > { %v407_v60 = vsel %vm374_vm0, %v405_v56, %v406_v57  ;;  %v387_v61 = vsel %vm374_vm0, %v385_v58, %v386_v59  ;;  %v495_v5 = vrot.slane %v1953_v54, 2  ;;  %v474_v7 = vrot.slane %v1943_v53, 2 }
  0x28   : > { %v409_v11 = vsel %vm374_vm0, %v406_v57, %v408_v1  ;;  %v389_v12 = vsel %vm374_vm0, %v386_v59, %v388_v3  ;;  %v475_v13 = vrot.slane %v1956_v55, 2  ;;  %v1576_v14 = vpack.c.bf16 %v1003_v9, %v1002_v8 }
  0x29   : > { %v496_v19 = vsel %vm463_vm1, %v494_v4, %v495_v5  ;;  %v1580_v22 = vpack.c.bf16 %v1005_v18, %v1004_v15  ;;  %v477_v30 = vrot.slane %v328_v63, 2  ;;  %v410_v45 = vrot.slane %v2026_v33, 1 }
  0x2a   : > { %522 = vrot.lane.b32.xlu1 %v1866_v24, %s1746_s6  ;;  %506 = vrot.lane.b32.xlu0 %v468_v25, %s1746_s6  ;;  %v476_v21 = vsel %vm463_vm1, %v474_v7, %v475_v13  ;;  %v497_v25 = vrot.slane %v340_v62, 2  ;;  %v391_v49 = vrot.slane %v2053_v44, 1  ;;  %v331_v62 = vld [vmem:[%s1820_s30 + $0x58] sm:$0x3] }
  0x2b   : > { %1577 = vmatprep.subr.bf16.mxu0 %v1576_v14  ;;  %1584 = vmatprep.subr.bf16.mxu1 %v1576_v14  ;;  %v478_v32 = vsel %vm463_vm1, %v475_v13, %v477_v30  ;;  %v393_v4 = vrot.slane %v331_v62, 1 }
  0x2c   : > { %1579 = vmatpush3.bf16.msra.mxu0 %v1576_v14  ;;  %1587 = vmatpush3.bf16.msra.mxu1 %v1576_v14  ;;  %v498_v31 = vsel %vm463_vm1, %v495_v5, %v497_v25  ;;  %v480_v14 = vrot.slane %v2053_v44, 2 }
  0x2d   : > { %1581 = vmatprep.subr.bf16.mxu0 %v1580_v22  ;;  %1585 = vmatprep.subr.bf16.mxu1 %v1580_v22  ;;  %v394_v9 = vsel %vm374_vm0, %v391_v49, %v393_v4 }
  0x2e   : > { %570 = vrot.lane.b32.xlu1 %v1873_v26, %s1747_s7  ;;  %554 = vrot.lane.b32.xlu0 %v1876_v27, %s1747_s7 }
  0x30   : > { %1583 = vmatpush3.bf16.msra.mxu0 %v1580_v22  ;;  %1588 = vmatpush3.bf16.msra.mxu1 %v1580_v22 }
  0x31   : > { %1550 = vmatprep.subr.msk.mxu0 %vm1063_vm2, %v1006_v23  ;;  %1586 = vmatprep.subr.msk.mxu1 %vm1063_vm2, %v1006_v23 }
  0x32   : > { %572 = vrot.lane.b32.xlu1 %v1879_v28, %s1747_s7  ;;  %556 = vrot.lane.b32.xlu0 %v1882_v29, %s1747_s7 }
  0x34   : > { %1551 = vmatpush3.msk.msra.mxu0 %vm1063_vm2, %v1006_v23  ;;  %1589 = vmatpush3.msk.msra.mxu1 %vm1063_vm2, %v1006_v23 }
  0x36   : > { %624 = vrot.lane.b32.xlu1 %v1897_v34, %s1748_s8  ;;  %608 = vrot.lane.b32.xlu0 %v382_v35, %s1748_s8 }
  0x3a   : > { %435 = vrot.lane.b32.xlu1 %v1897_v34, %s1745_s5  ;;  %419 = vrot.lane.b32.xlu0 %v382_v35, %s1745_s5  ;;  %v2029_v35 = vld [vmem:[%s1820_s30 + $0x48] sm:$0xff] }
  0x3b   : > { %2573 = vst [vmem:[#allocation8_spill] sm:$0xff] %v2029_v35  ;;  %v390_v48 = vrot.slane %v2029_v35, 1  ;;  %v479_v13 = vrot.slane %v2029_v35, 2 }
  0x3d   : > { %v392_v58 = vsel %vm374_vm0, %v390_v48, %v391_v49 }
  0x3e   : > { %626 = vrot.lane.b32.xlu1 %v1911_v42, %s1748_s8  ;;  %610 = vrot.lane.b32.xlu0 %v384_v43, %s1748_s8 }
  0x42   : > { %677 = vrot.lane.b32.xlu1 %v1920_v46, %s1749_s9  ;;  %661 = vrot.lane.b32.xlu0 %v471_v47, %s1749_s9 }
  0x46   : > { %437 = vrot.lane.b32.xlu1 %v1911_v42, %s1745_s5  ;;  %421 = vrot.lane.b32.xlu0 %v384_v43, %s1745_s5  ;;  %v2050_v43 = vld [vmem:[%s1820_s30 + $0xb0] sm:$0xff] }
  0x47   : > { %2574 = vst [vmem:[#allocation9_spill] sm:$0xff] %v2050_v43 }
  0x4a   : > { %524 = vrot.lane.b32.xlu1 %v1920_v46, %s1746_s6  ;;  %508 = vrot.lane.b32.xlu0 %v471_v47, %s1746_s6  ;;  %v411_v47 = vrot.slane %v2050_v43, 1 }
  0x4c   : > { %v412_v57 = vsel %vm374_vm0, %v410_v45, %v411_v47 }
  0x4e   : > { %679 = vrot.lane.b32.xlu1 %v1933_v50, %s1749_s9  ;;  %663 = vrot.lane.b32.xlu0 %v473_v51, %s1749_s9 }
  0x52   : > { %727 = vrot.lane.b32.xlu1 %v1940_v52, %s1750_s10  ;;  %711 = vrot.lane.b32.xlu0 %v1943_v53, %s1750_s10 }
  0x56   : > { %526 = vrot.lane.b32.xlu1 %v1933_v50, %s1746_s6  ;;  %510 = vrot.lane.b32.xlu0 %v473_v51, %s1746_s6 }
  0x5a   : > { %574 = vrot.lane.b32.xlu1 %v1940_v52, %s1747_s7  ;;  %558 = vrot.lane.b32.xlu0 %v1943_v53, %s1747_s7 }
  0x5e   : > { %729 = vrot.lane.b32.xlu1 %v1953_v54, %s1750_s10  ;;  %713 = vrot.lane.b32.xlu0 %v1956_v55, %s1750_s10 }
  0x62   : > { %781 = vrot.lane.b32.xlu1 %v407_v60, %s1751_s11  ;;  %765 = vrot.lane.b32.xlu0 %v387_v61, %s1751_s11 }
  0x66   : > { %576 = vrot.lane.b32.xlu1 %v1953_v54, %s1747_s7  ;;  %560 = vrot.lane.b32.xlu0 %v1956_v55, %s1747_s7 }
  0x6a   : > { %628 = vrot.lane.b32.xlu1 %v407_v60, %s1748_s8  ;;  %612 = vrot.lane.b32.xlu0 %v387_v61, %s1748_s8 }
  0x6e   : > { %783 = vrot.lane.b32.xlu1 %v409_v11, %s1751_s11  ;;  %767 = vrot.lane.b32.xlu0 %v389_v12, %s1751_s11 }
  0x72   : > { %834 = vrot.lane.b32.xlu1 %v496_v19, %s1752_s28  ;;  %818 = vrot.lane.b32.xlu0 %v476_v21, %s1752_s28 }
  0x76   : > { %439 = vrot.lane.b32.xlu1 %v407_v60, %s1745_s5  ;;  %423 = vrot.lane.b32.xlu0 %v387_v61, %s1745_s5  ;;  %v343_v61 = vld [vmem:[%s1820_s30 + $0xb8] sm:$0x3]  ;;  %s1520_s30 = sadd.s32 8, %s1808_s22  ;;  %s2600_s22 = smov (!%p312_p8, %s1808_s22), 15 }
  0x77   : > { %v413_v3 = vrot.slane %v343_v61, 1  ;;  %p299_p7 = scmp.lt.s32.totalorder %s1520_s30, 17  ;;  %v502_v45 = vrot.slane %v343_v61, 2 }
  0x79   : > { %v414_v8 = vsel %vm374_vm0, %v411_v47, %v413_v3  ;;  %v482_v47 = vrot.slane %v331_v62, 2  ;;  %s2598_s30 = smov (!%p299_p7, %s1520_s30), 17 }
  0x7a   : > { %630 = vrot.lane.b32.xlu1 %v409_v11, %s1748_s8  ;;  %614 = vrot.lane.b32.xlu0 %v389_v12, %s1748_s8  ;;  %s1592_s13 = smul.u32 3, %s2598_s30 }
  0x7c   : > { %s303_s14 = sadd.s32 %s1592_s13, %s1591_s24 }
  0x7d   : > { %s1471_s15 = sshll.u32 %s303_s14, 3 }
  0x7e   : > { %681 = vrot.lane.b32.xlu1 %v496_v19, %s1749_s9  ;;  %665 = vrot.lane.b32.xlu0 %v476_v21, %s1749_s9  ;;  %s2155_s26 = scalar_lea.vmem %s2554_s1, %s1471_s15 }
  0x82   : > { %836 = vrot.lane.b32.xlu1 %v498_v31, %s1752_s28  ;;  %820 = vrot.lane.b32.xlu0 %v478_v32, %s1752_s28 }
  0x86   : > { %441 = vrot.lane.b32.xlu1 %v409_v11, %s1745_s5  ;;  %425 = vrot.lane.b32.xlu0 %v389_v12, %s1745_s5  ;;  %v499_v11 = vrot.slane %v2026_v33, 2  ;;  %v500_v12 = vrot.slane %v2050_v43, 2 }
  0x8a   : > { %528 = vrot.lane.b32.xlu1 %v496_v19, %s1746_s6  ;;  %512 = vrot.lane.b32.xlu0 %v476_v21, %s1746_s6  ;;  %v501_v19 = vsel %vm463_vm1, %v499_v11, %v500_v12  ;;  %v481_v21 = vsel %vm463_vm1, %v479_v13, %v480_v14 }
  0x8e   : > { %683 = vrot.lane.b32.xlu1 %v498_v31, %s1749_s9  ;;  %667 = vrot.lane.b32.xlu0 %v478_v32, %s1749_s9 }
  0x90   : > { %v2031_v36 = vpop.permute.xlu1 %417  ;;  %v2033_v37 = vpop.permute.xlu0 %415 }
  0x92   : > { %731 = vrot.lane.b32.xlu1 %v2026_v33, %s1750_s10  ;;  %715 = vrot.lane.b32.xlu0 %v2029_v35, %s1750_s10 }
  0x94   : > { %v2039_v38 = vpop.permute.xlu1 %433  ;;  %v2041_v39 = vpop.permute.xlu0 %431 }
  0x96   : > { %530 = vrot.lane.b32.xlu1 %v498_v31, %s1746_s6  ;;  %514 = vrot.lane.b32.xlu0 %v478_v32, %s1746_s6 }
  0x98   : > { %v2045_v40 = vpop.permute.xlu1 %520  ;;  %v2047_v41 = vpop.permute.xlu0 %504 }
  0x9a   : > { %578 = vrot.lane.b32.xlu1 %v2026_v33, %s1747_s7  ;;  %562 = vrot.lane.b32.xlu0 %v2029_v35, %s1747_s7 }
  0x9c   : > { %v2063_v51 = vpop.permute.xlu1 %522  ;;  %v2065_v56 = vpop.permute.xlu0 %506 }
  0x9e   : > { %733 = vrot.lane.b32.xlu1 %v2050_v43, %s1750_s10  ;;  %717 = vrot.lane.b32.xlu0 %v2053_v44, %s1750_s10 }
  0xa0   : > { %v2073_v59 = vpop.permute.xlu1 %570  ;;  %v2075_v60 = vpop.permute.xlu0 %554 }
  0xa2   : > { %785 = vrot.lane.b32.xlu1 %v412_v57, %s1751_s11  ;;  %769 = vrot.lane.b32.xlu0 %v392_v58, %s1751_s11 }
  0xa4   : > { %v2081_v63 = vpop.permute.xlu1 %572  ;;  %v2083_v1 = vpop.permute.xlu0 %556 }
  0xa6   : > { %580 = vrot.lane.b32.xlu1 %v2050_v43, %s1747_s7  ;;  %564 = vrot.lane.b32.xlu0 %v2053_v44, %s1747_s7  ;;  %v2177_v43 = vld [vmem:[%s2155_s26 + $0x8] sm:$0xff] }
  0xa7   : > { %v604_v46 = vrot.slane %v2177_v43, 1 }
  0xa8   : > { %v2089_v5 = vpop.permute.xlu1 %624  ;;  %v2091_v7 = vpop.permute.xlu0 %608 }
  0xaa   : > { %632 = vrot.lane.b32.xlu1 %v412_v57, %s1748_s8  ;;  %616 = vrot.lane.b32.xlu0 %v392_v58, %s1748_s8 }
  0xac   : > { %v2101_v15 = vpop.permute.xlu1 %435  ;;  %v2103_v18 = vpop.permute.xlu0 %419 }
  0xad   : > { %v877_v35 = vsel %vm866_vm3, %v1873_v26, %v2101_v15  ;;  %v869_v33 = vsel %vm866_vm3, %v1876_v27, %v2103_v18 }
  0xae   : > { %787 = vrot.lane.b32.xlu1 %v414_v8, %s1751_s11  ;;  %771 = vrot.lane.b32.xlu0 %v394_v9, %s1751_s11 }
  0xb0   : > { %v2109_v22 = vpop.permute.xlu1 %626  ;;  %v2111_v23 = vpop.permute.xlu0 %610 }
  0xb2   : > { %838 = vrot.lane.b32.xlu1 %v501_v19, %s1752_s28  ;;  %822 = vrot.lane.b32.xlu0 %v481_v21, %s1752_s28 }
  0xb4   : > { %v2115_v25 = vpop.permute.xlu1 %677  ;;  %v2117_v30 = vpop.permute.xlu0 %661 }
  0xb6   : > { %443 = vrot.lane.b32.xlu1 %v412_v57, %s1745_s5  ;;  %427 = vrot.lane.b32.xlu0 %v392_v58, %s1745_s5  ;;  %v503_v57 = vsel %vm463_vm1, %v500_v12, %v502_v45  ;;  %v483_v58 = vsel %vm463_vm1, %v480_v14, %v482_v47 }
  0xb8   : > { %v2122_v31 = vpop.permute.xlu1 %437  ;;  %v2124_v32 = vpop.permute.xlu0 %421 }
  0xba   : > { %634 = vrot.lane.b32.xlu1 %v414_v8, %s1748_s8  ;;  %618 = vrot.lane.b32.xlu0 %v394_v9, %s1748_s8 }
  0xbc   : > { %v525_v48 = vpop.permute.xlu1 %524  ;;  %v509_v49 = vpop.permute.xlu0 %508 }
  0xbe   : > { %685 = vrot.lane.b32.xlu1 %v501_v19, %s1749_s9  ;;  %669 = vrot.lane.b32.xlu0 %v481_v21, %s1749_s9 }
  0xc0   : > { %v2132_v3 = vpop.permute.xlu1 %679  ;;  %v2134_v4 = vpop.permute.xlu0 %663 }
  0xc2   : > { %840 = vrot.lane.b32.xlu1 %v503_v57, %s1752_s28  ;;  %824 = vrot.lane.b32.xlu0 %v483_v58, %s1752_s28 }
  0xc4   : > { %v2138_v61 = vpop.permute.xlu1 %727  ;;  %v2140_v62 = vpop.permute.xlu0 %711 }
  0xc6   : > { %445 = vrot.lane.b32.xlu1 %v414_v8, %s1745_s5  ;;  %429 = vrot.lane.b32.xlu0 %v394_v9, %s1745_s5  ;;  %v2160_v8 = vld [vmem:[%s2155_s26] sm:$0xff] }
  0xc7   : > { %v603_v50 = vrot.slane %v2160_v8, 1 }
  0xc8   : > { %v2146_v11 = vpop.permute.xlu1 %526  ;;  %v2148_v12 = vpop.permute.xlu0 %510 }
  0xca   : > { %532 = vrot.lane.b32.xlu1 %v501_v19, %s1746_s6  ;;  %516 = vrot.lane.b32.xlu0 %v481_v21, %s1746_s6 }
  0xcc   : > { %v575_v13 = vpop.permute.xlu1 %574  ;;  %v559_v14 = vpop.permute.xlu0 %558 }
  0xce   : > { %687 = vrot.lane.b32.xlu1 %v503_v57, %s1749_s9  ;;  %671 = vrot.lane.b32.xlu0 %v483_v58, %s1749_s9 }
  0xd0   : > { %v2162_v9 = vpop.permute.xlu1 %729  ;;  %v2164_v19 = vpop.permute.xlu0 %713 }
  0xd2   : > { %735 = vrot.lane.b32.xlu1 %v2160_v8, %s1750_s10  ;;  %719 = vrot.lane.b32.xlu0 %v1837_v10, %s1750_s10 }
  0xd4   : > { %v782_v21 = vpop.permute.xlu1 %781  ;;  %v766_v45 = vpop.permute.xlu0 %765 }
  0xd6   : > { %534 = vrot.lane.b32.xlu1 %v503_v57, %s1746_s6  ;;  %518 = vrot.lane.b32.xlu0 %v483_v58, %s1746_s6  ;;  %v894_v57 = vsel %vm883_vm4, %v877_v35, %v525_v48  ;;  %v886_v58 = vsel %vm883_vm4, %v869_v33, %v509_v49  ;;  %v867_v33 = vsel %vm866_vm3, %v1827_v2, %v2033_v37  ;;  %s1473_s6 = sshll.u32 %s2600_s22, 1 }
  0xd7   : > { %v911_v15 = vsel %vm900_vm5, %v894_v57, %v575_v13  ;;  %v903_v42 = vsel %vm900_vm5, %v886_v58, %v559_v14  ;;  %v875_v35 = vsel %vm866_vm3, %v1837_v10, %v2041_v39  ;;  %v605_v49 = vsel %vm374_vm0, %v603_v50, %v604_v46 }
  0xd8   : > { %v2172_v47 = vpop.permute.xlu1 %576  ;;  %v2174_v44 = vpop.permute.xlu0 %560  ;;  %v892_v48 = vsel %vm883_vm4, %v875_v35, %v2045_v40  ;;  %v657_v35 = vrot.slane %v2177_v43, 2 }
  0xd9   : > { %v909_v2 = vsel %vm900_vm5, %v892_v48, %v2073_v59 }
  0xda   : > { %582 = vrot.lane.b32.xlu1 %v2160_v8, %s1747_s7  ;;  %566 = vrot.lane.b32.xlu0 %v1837_v10, %s1747_s7  ;;  %v926_v13 = vsel %vm917_vm6, %v909_v2, %v2089_v5 }
  0xdb   : > { %v943_v50 = vsel %vm934_vm7, %v926_v13, %v2115_v25 }
  0xdc   : > { %v629_v27 = vpop.permute.xlu1 %628  ;;  %v613_v18 = vpop.permute.xlu0 %612  ;;  %v960_v59 = vsel %vm951_vm8, %v943_v50, %v2138_v61 }
  0xdd   : > { %v2196_v34 = vsel %vm917_vm6, %v911_v15, %v629_v27  ;;  %v2199_v55 = vsel %vm917_vm6, %v903_v42, %v613_v18  ;;  %v884_v42 = vsel %vm883_vm4, %v867_v33, %v2047_v41  ;;  %v977_v5 = vsel %vm968_vm9, %v960_v59, %v782_v21 }
  0xde   : > { %737 = vrot.lane.b32.xlu1 %v2177_v43, %s1750_s10  ;;  %721 = vrot.lane.b32.xlu0 %v1832_v6, %s1750_s10  ;;  %v901_v10 = vsel %vm900_vm5, %v884_v42, %v2075_v60  ;;  %v870_v15 = vsel %vm866_vm3, %v1882_v29, %v2124_v32  ;;  %v656_v27 = vrot.slane %v2160_v8, 2 }
  0xdf   : > { %v918_v40 = vsel %vm917_vm6, %v901_v10, %v2091_v7  ;;  %v887_v33 = vsel %vm883_vm4, %v870_v15, %v2148_v12 }
  0xe0   : > { %v784_v37 = vpop.permute.xlu1 %783  ;;  %v768_v39 = vpop.permute.xlu0 %767  ;;  %v935_v41 = vsel %vm934_vm7, %v918_v40, %v2117_v30  ;;  %v346_v30 = vld [vmem:[%s2155_s26 + $0x10] sm:$0x3]  ;;  %v904_v32 = vsel %vm900_vm5, %v887_v33, %v2174_v44 }
  0xe1   : > { %v952_v60 = vsel %vm951_vm8, %v935_v41, %v2140_v62  ;;  %v606_v61 = vrot.slane %v346_v30, 1 }
  0xe2   : > { %789 = vrot.lane.b32.xlu1 %v605_v49, %s1751_s11  ;;  %773 = vrot.lane.b32.xlu0 %v1850_v17, %s1751_s11  ;;  %v969_v7 = vsel %vm968_vm9, %v952_v60, %v766_v45  ;;  %v878_v45 = vsel %vm866_vm3, %v1879_v28, %v2122_v31 }
  0xe3   : > { %v895_v18 = vsel %vm883_vm4, %v878_v45, %v2146_v11  ;;  %v607_v31 = vsel %vm374_vm0, %v604_v46, %v606_v61  ;;  %v876_v46 = vsel %vm866_vm3, %v1832_v6, %v2039_v38 }
  0xe4   : > { %v835_v25 = vpop.permute.xlu1 %834  ;;  %v819_v14 = vpop.permute.xlu0 %818  ;;  %v912_v29 = vsel %vm900_vm5, %v895_v18, %v2172_v47  ;;  %v658_v47 = vsel %vm463_vm1, %v656_v27, %v657_v35 }
  0xe5   : > { %v994_v57 = vsel %vm985_vm10, %v977_v5, %v835_v25  ;;  %v986_v58 = vsel %vm985_vm10, %v969_v7, %v819_v14  ;;  %v348_v7 = vld [vmem:[%s2155_s26 + $0x20] sm:$0xff] }
  0xe6   : > { %584 = vrot.lane.b32.xlu1 %v2177_v43, %s1747_s7  ;;  %1564 = vmatprep.mubr.msk.f32.mxu1 %vm1014_vm11, %v994_v57  ;;  %v893_v43 = vsel %vm883_vm4, %v876_v46, %v2063_v51  ;;  %v761_v14 = vrot.slane %v348_v7, 1  ;;  %v2576_v57 = vld [vmem:[#allocation6_spill] sm:$0xff] }
  0xe7   : > { %568 = vrot.lane.b32.xlu0 %v1832_v6, %s1747_s7  ;;  %1552 = vmatprep.mubr.msk.f32.mxu0 %vm1014_vm11, %v986_v58  ;;  %s1474_s7 = sshll.u32 %s2596_s16, 5 }
  0xe8   : > { %v440_v62 = vpop.permute.xlu1 %439  ;;  %v424_v21 = vpop.permute.xlu0 %423 }
  0xe9   : > { %v879_v13 = vsel %vm866_vm3, %v1940_v52, %v440_v62  ;;  %v347_v52 = vld [vmem:[%s2155_s26 + $0x18] sm:$0xff] }
  0xea   : > { %636 = vrot.lane.b32.xlu1 %v605_v49, %s1748_s8  ;;  %v760_v25 = vrot.slane %v347_v52, 1 }
  0xeb   : > { %620 = vrot.lane.b32.xlu0 %v1850_v17, %s1748_s8  ;;  %v868_v17 = vsel %vm866_vm3, %v1823_v0, %v2031_v36  ;;  %v910_v0 = vsel %vm900_vm5, %v893_v43, %v2081_v63 }
  0xec   : > { %v631_v8 = vpop.permute.xlu1 %630  ;;  %v615_v48 = vpop.permute.xlu0 %614  ;;  %v885_v44 = vsel %vm883_vm4, %v868_v17, %v2065_v56  ;;  %v927_v51 = vsel %vm917_vm6, %v910_v0, %v2109_v22 }
  0xed   : > { %v2267_v11 = vsel %vm917_vm6, %v912_v29, %v631_v8  ;;  %v2270_v12 = vsel %vm917_vm6, %v904_v32, %v615_v48  ;;  %v902_v36 = vsel %vm900_vm5, %v885_v44, %v2083_v1  ;;  %v944_v42 = vsel %vm934_vm7, %v927_v51, %v2132_v3  ;;  %v2577_v29 = vld [vmem:[#allocation2_spill] sm:$0xff]  ;;  %v2578_v48 = vld [vmem:[#allocation3_spill] sm:$0xff] }
  0xee   : > { %791 = vrot.lane.b32.xlu1 %v607_v31, %s1751_s11  ;;  %v919_v56 = vsel %vm917_vm6, %v902_v36, %v2111_v23  ;;  %v961_v63 = vsel %vm951_vm8, %v944_v42, %v2162_v9  ;;  %v659_v9 = vrot.slane %v346_v30, 2 }
  0xef   : > { %775 = vrot.lane.b32.xlu0 %v1847_v16, %s1751_s11  ;;  %v936_v49 = vsel %vm934_vm7, %v919_v56, %v2134_v4  ;;  %v978_v22 = vsel %vm968_vm9, %v961_v63, %v784_v37 }
  0xf0   : > { %v2290_v6 = vpop.permute.xlu1 %681  ;;  %v2292_v38 = vpop.permute.xlu0 %665  ;;  %v953_v1 = vsel %vm951_vm8, %v936_v49, %v2164_v19  ;;  %v2580_v49 = vld [vmem:[#allocation5_spill] sm:$0xff] }
  0xf1   : > { %v970_v23 = vsel %vm968_vm9, %v953_v1, %v768_v39  ;;  %v660_v39 = vsel %vm463_vm1, %v657_v35, %v659_v9  ;;  %v813_v35 = vrot.slane %v347_v52, 2 }
  0xf2   : > { %842 = vrot.lane.b32.xlu1 %v658_v47, %s1752_s28 }
  0xf3   : > { %826 = vrot.lane.b32.xlu0 %v1859_v20, %s1752_s28 }
  0xf4   : > { %v837_v2 = vpop.permute.xlu1 %836  ;;  %v821_v3 = vpop.permute.xlu0 %820 }
  0xf5   : > { %v995_v10 = vsel %vm985_vm10, %v978_v22, %v837_v2  ;;  %v987_v4 = vsel %vm985_vm10, %v970_v23, %v821_v3 }
  0xf6   : > { %638 = vrot.lane.b32.xlu1 %v607_v31, %s1748_s8  ;;  %1565 = vmatmul.mubr.msk.f32.vlgmr.msra.gmra.mrb[0].mxu1 %vm1014_vm11, %v995_v10  ;;  %v814_v31 = vrot.slane %v348_v7, 2  ;;  %v945_v10 = vsel %vm934_vm7, %v2196_v34, %v2290_v6 }
  0xf7   : > { %622 = vrot.lane.b32.xlu0 %v1847_v16, %s1748_s8  ;;  %1553 = vmatmul.mubr.msk.f32.vlgmr.msra.gmra.mrb[0].mxu0 %vm1014_vm11, %v987_v4  ;;  %v871_v16 = vsel %vm866_vm3, %v1943_v53, %v424_v21  ;;  %v937_v4 = vsel %vm934_vm7, %v2199_v55, %v2292_v38  ;;  %s316_s8 = sadd.s32 %s1474_s7, %s1473_s6 }
  0xf8   : > { %v442_v19 = vpop.permute.xlu1 %441  ;;  %v426_v37 = vpop.permute.xlu0 %425  ;;  %v815_v17 = vsel %vm463_vm1, %v813_v35, %v814_v31 }
  0xf9   : > { %v880_v30 = vsel %vm866_vm3, %v1953_v54, %v442_v19  ;;  %v872_v58 = vsel %vm866_vm3, %v2576_v57, %v426_v37 }
  0xfa   : > { %689 = vrot.lane.b32.xlu1 %v658_v47, %s1749_s9  ;;  %v2579_v47 = vld [vmem:[#allocation4_spill] sm:$0xff] }
  0xfb   : > { %673 = vrot.lane.b32.xlu0 %v1859_v20, %s1749_s9 }
  0xfc   : > { %v529_v40 = vpop.permute.xlu1 %528  ;;  %v513_v50 = vpop.permute.xlu0 %512 }
  0xfd   : > { %v896_v41 = vsel %vm883_vm4, %v879_v13, %v529_v40  ;;  %v888_v59 = vsel %vm883_vm4, %v871_v16, %v513_v50 }
  0xfe   : > { %844 = vrot.lane.b32.xlu1 %v660_v39, %s1752_s28 }
  0xff   : > { %828 = vrot.lane.b32.xlu0 %v1866_v24, %s1752_s28 }
 0x100   : > { %v2331_v20 = vpop.permute.xlu1 %683  ;;  %v2333_v60 = vpop.permute.xlu0 %667 }
 0x102   : > { %691 = vrot.lane.b32.xlu1 %v660_v39, %s1749_s9 }
 0x103   : > { %675 = vrot.lane.b32.xlu0 %v1866_v24, %s1749_s9  ;;  %v349_v24 = vld [vmem:[%s2155_s26 + $0x28] sm:$0x3]  ;;  %s1475_s9 = sshll.u32 %s316_s8, 3 }
 0x104   : > { %v732_v53 = vpop.permute.xlu1 %731  ;;  %v716_v5 = vpop.permute.xlu0 %715  ;;  %v763_v15 = vrot.slane %v349_v24, 1  ;;  %v816_v46 = vrot.slane %v349_v24, 2  ;;  %s2492_s27 = scalar_lea.vmem %s2557_s4, %s1475_s9 }
 0x105   : > { %v962_v9 = vsel %vm951_vm8, %v945_v10, %v732_v53  ;;  %v954_v19 = vsel %vm951_vm8, %v937_v4, %v716_v5  ;;  %v946_v5 = vsel %vm934_vm7, %v2267_v11, %v2331_v20  ;;  %v2581_v20 = vld [vmem:[#allocation7_spill] sm:$0xff] }
 0x106   : > { %739 = vrot.lane.b32.xlu1 %v347_v52, %s1750_s10  ;;  %v764_v32 = vsel %vm374_vm0, %v761_v14, %v763_v15  ;;  %v817_v0 = vsel %vm463_vm1, %v814_v31, %v816_v46 }
 0x107   : > { %723 = vrot.lane.b32.xlu0 %v1873_v26, %s1750_s10  ;;  %v762_v26 = vsel %vm374_vm0, %v760_v25, %v761_v14 }
 0x108   : > { %v531_v61 = vpop.permute.xlu1 %530  ;;  %v515_v62 = vpop.permute.xlu0 %514 }
 0x109   : > { %v897_v21 = vsel %vm883_vm4, %v880_v30, %v531_v61  ;;  %v889_v45 = vsel %vm883_vm4, %v872_v58, %v515_v62 }
 0x10a   : > { %741 = vrot.lane.b32.xlu1 %v348_v7, %s1750_s10  ;;  %v938_v7 = vsel %vm934_vm7, %v2270_v12, %v2333_v60 }
 0x10b   : > { %725 = vrot.lane.b32.xlu0 %v1879_v28, %s1750_s10 }
 0x10c   : > { %v579_v27 = vpop.permute.xlu1 %578  ;;  %v563_v54 = vpop.permute.xlu0 %562 }
 0x10d   : > { %v913_v18 = vsel %vm900_vm5, %v896_v41, %v579_v27  ;;  %v905_v33 = vsel %vm900_vm5, %v888_v59, %v563_v54 }
 0x10e   : > { %793 = vrot.lane.b32.xlu1 %v762_v26, %s1751_s11 }
 0x10f   : > { %777 = vrot.lane.b32.xlu0 %v2577_v29, %s1751_s11 }
 0x110   : > { %v734_v8 = vpop.permute.xlu1 %733  ;;  %v718_v28 = vpop.permute.xlu0 %717 }
 0x111   : > { %v963_v25 = vsel %vm951_vm8, %v946_v5, %v734_v8  ;;  %v955_v14 = vsel %vm951_vm8, %v938_v7, %v718_v28 }
 0x112   : > { %795 = vrot.lane.b32.xlu1 %v764_v32, %s1751_s11 }
 0x113   : > { %779 = vrot.lane.b32.xlu0 %v2578_v48, %s1751_s11 }
 0x114   : > { %v786_v43 = vpop.permute.xlu1 %785  ;;  %v770_v44 = vpop.permute.xlu0 %769 }
 0x115   : > { %v979_v37 = vsel %vm968_vm9, %v962_v9, %v786_v43  ;;  %v971_v39 = vsel %vm968_vm9, %v954_v19, %v770_v44 }
 0x116   : > { %846 = vrot.lane.b32.xlu1 %v815_v17, %s1752_s28 }
 0x117   : > { %830 = vrot.lane.b32.xlu0 %v2579_v47, %s1752_s28 }
 0x118   : > { %v581_v36 = vpop.permute.xlu1 %580  ;;  %v565_v51 = vpop.permute.xlu0 %564 }
 0x119   : > { %v914_v56 = vsel %vm900_vm5, %v897_v21, %v581_v36  ;;  %v906_v42 = vsel %vm900_vm5, %v889_v45, %v565_v51  ;;  %v2582_v21 = vld [vmem:[#allocation8_spill] sm:$0xff] }
 0x11a   : > { %848 = vrot.lane.b32.xlu1 %v817_v0, %s1752_s28 }
 0x11b   : > { %832 = vrot.lane.b32.xlu0 %v2580_v49, %s1752_s28 }
 0x11c   : > { %v633_v63 = vpop.permute.xlu1 %632  ;;  %v617_v1 = vpop.permute.xlu0 %616 }
 0x11d   : > { %v2374_v22 = vsel %vm917_vm6, %v913_v18, %v633_v63  ;;  %v2377_v23 = vsel %vm917_vm6, %v905_v33, %v617_v1 }
 0x120   : > { %v788_v2 = vpop.permute.xlu1 %787  ;;  %v772_v3 = vpop.permute.xlu0 %771 }
 0x121   : > { %v980_v30 = vsel %vm968_vm9, %v963_v25, %v788_v2  ;;  %v972_v57 = vsel %vm968_vm9, %v955_v14, %v772_v3 }
 0x124   : > { %v839_v13 = vpop.permute.xlu1 %838  ;;  %v823_v16 = vpop.permute.xlu0 %822 }
 0x125   : > { %v996_v40 = vsel %vm985_vm10, %v979_v37, %v839_v13  ;;  %v988_v50 = vsel %vm985_vm10, %v971_v39, %v823_v16 }
 0x126   : > { %1555 = vmatprep.mubr.msk.f32.mxu0 %vm1014_vm11, %v988_v50  ;;  %1567 = vmatprep.mubr.msk.f32.mxu1 %vm1014_vm11, %v996_v40 }
 0x128   : > { %v444_v34 = vpop.permute.xlu1 %443  ;;  %v428_v55 = vpop.permute.xlu0 %427 }
 0x129   : > { %v881_v60 = vsel %vm866_vm3, %v2581_v20, %v444_v34  ;;  %v873_v45 = vsel %vm866_vm3, %v2582_v21, %v428_v55 }
 0x12c   : > { %v635_v6 = vpop.permute.xlu1 %634  ;;  %v619_v38 = vpop.permute.xlu0 %618 }
 0x12d   : > { %v931_v41 = vsel %vm917_vm6, %v914_v56, %v635_v6  ;;  %v923_v59 = vsel %vm917_vm6, %v906_v42, %v619_v38 }
 0x130   : > { %v686_v52 = vpop.permute.xlu1 %685  ;;  %v670_v53 = vpop.permute.xlu0 %669 }
 0x131   : > { %v947_v42 = vsel %vm934_vm7, %v2374_v22, %v686_v52  ;;  %v939_v49 = vsel %vm934_vm7, %v2377_v23, %v670_v53 }
 0x134   : > { %v841_v58 = vpop.permute.xlu1 %840  ;;  %v825_v61 = vpop.permute.xlu0 %824 }
 0x135   : > { %v997_v62 = vsel %vm985_vm10, %v980_v30, %v841_v58  ;;  %v989_v24 = vsel %vm985_vm10, %v972_v57, %v825_v61 }
 0x136   : > { %1556 = vmatmul.mubr.msk.f32.gmra.mrb[2].mxu0 %vm1014_vm11, %v989_v24  ;;  %1568 = vmatmul.mubr.msk.f32.gmra.mrb[2].mxu1 %vm1014_vm11, %v997_v62 }
 0x138   : > { %v2409_v11 = vpop.permute.xlu1 %445  ;;  %v2411_v12 = vpop.permute.xlu0 %429 }
 0x13c   : > { %v533_v26 = vpop.permute.xlu1 %532  ;;  %v517_v15 = vpop.permute.xlu0 %516 }
 0x13d   : > { %v898_v27 = vsel %vm883_vm4, %v881_v60, %v533_v26  ;;  %v890_v54 = vsel %vm883_vm4, %v873_v45, %v517_v15  ;;  %v2583_v60 = vld [vmem:[#allocation9_spill] sm:$0xff]  ;;  %v2584_v15 = vld [vmem:[#allocation10_spill] sm:$0xff] }
 0x13e   : > { %v882_v21 = vsel %vm866_vm3, %v2583_v60, %v2409_v11 }
 0x140   : > { %v688_v18 = vpop.permute.xlu1 %687  ;;  %v672_v33 = vpop.permute.xlu0 %671 }
 0x141   : > { %v948_v13 = vsel %vm934_vm7, %v931_v41, %v688_v18  ;;  %v940_v16 = vsel %vm934_vm7, %v923_v59, %v672_v33  ;;  %v874_v18 = vsel %vm866_vm3, %v2584_v15, %v2411_v12 }
 0x144   : > { %v736_v35 = vpop.permute.xlu1 %735  ;;  %v720_v31 = vpop.permute.xlu0 %719 }
 0x145   : > { %v964_v63 = vsel %vm951_vm8, %v947_v42, %v736_v35  ;;  %v956_v1 = vsel %vm951_vm8, %v939_v49, %v720_v31 }
 0x148   : > { %v535_v29 = vpop.permute.xlu1 %534  ;;  %v519_v32 = vpop.permute.xlu0 %518 }
 0x149   : > { %v891_v35 = vsel %vm883_vm4, %v874_v18, %v519_v32 }
 0x14c   : > { %v583_v8 = vpop.permute.xlu1 %582  ;;  %v567_v28 = vpop.permute.xlu0 %566 }
 0x14d   : > { %v915_v58 = vsel %vm900_vm5, %v898_v27, %v583_v8  ;;  %v907_v62 = vsel %vm900_vm5, %v890_v54, %v567_v28  ;;  %v899_v27 = vsel %vm883_vm4, %v882_v21, %v535_v29 }
 0x150   : > { %v738_v48 = vpop.permute.xlu1 %737  ;;  %v722_v17 = vpop.permute.xlu0 %721 }
 0x151   : > { %v965_v40 = vsel %vm951_vm8, %v948_v13, %v738_v48  ;;  %v957_v50 = vsel %vm951_vm8, %v940_v16, %v722_v17 }
 0x154   : > { %v790_v46 = vpop.permute.xlu1 %789  ;;  %v774_v43 = vpop.permute.xlu0 %773 }
 0x155   : > { %v981_v2 = vsel %vm968_vm9, %v964_v63, %v790_v46  ;;  %v973_v10 = vsel %vm968_vm9, %v956_v1, %v774_v43 }
 0x158   : > { %v585_v44 = vpop.permute.xlu1 %584 }
 0x159   : > { %v569_v47 = vpop.permute.xlu0 %568  ;;  %v916_v31 = vsel %vm900_vm5, %v899_v27, %v585_v44 }
 0x15a   : > { %v908_v48 = vsel %vm900_vm5, %v891_v35, %v569_v47 }
 0x15c   : > { %v637_v0 = vpop.permute.xlu1 %636 }
 0x15d   : > { %v621_v36 = vpop.permute.xlu0 %620  ;;  %v932_v24 = vsel %vm917_vm6, %v915_v58, %v637_v0 }
 0x15e   : > { %v924_v45 = vsel %vm917_vm6, %v907_v62, %v621_v36 }
 0x160   : > { %v792_v51 = vpop.permute.xlu1 %791 }
 0x161   : > { %v776_v56 = vpop.permute.xlu0 %775  ;;  %v982_v34 = vsel %vm968_vm9, %v965_v40, %v792_v51 }
 0x162   : > { %v974_v6 = vsel %vm968_vm9, %v957_v50, %v776_v56 }
 0x164   : > { %v843_v3 = vpop.permute.xlu1 %842 }
 0x165   : > { %v998_v4 = vsel %vm985_vm10, %v981_v2, %v843_v3  ;;  %v827_v9 = vpop.permute.xlu0 %826  ;;  %v2480_v2 = vld [vmem:[%s2556_s3] ss:$0 sm:$0xff] }
 0x166   : > { %v990_v19 = vsel %vm985_vm10, %v973_v10, %v827_v9  ;;  %1570 = vmatprep.mubr.msk.f32.mxu1 %vm1014_vm11, %v998_v4 }
 0x167   : > { %1558 = vmatprep.mubr.msk.f32.mxu0 %vm1014_vm11, %v990_v19 }
 0x168   : > { %v639_v22 = vpop.permute.xlu1 %638 }
 0x169   : > { %v623_v23 = vpop.permute.xlu0 %622  ;;  %v933_v17 = vsel %vm917_vm6, %v916_v31, %v639_v22 }
 0x16a   : > { %v925_v43 = vsel %vm917_vm6, %v908_v48, %v623_v23 }
 0x16c   : > { %v690_v37 = vpop.permute.xlu1 %689 }
 0x16d   : > { %v674_v39 = vpop.permute.xlu0 %673  ;;  %v949_v26 = vsel %vm934_vm7, %v932_v24, %v690_v37 }
 0x16e   : > { %v941_v33 = vsel %vm934_vm7, %v924_v45, %v674_v39 }
 0x170   : > { %v845_v55 = vpop.permute.xlu1 %844 }
 0x171   : > { %v999_v38 = vsel %vm985_vm10, %v982_v34, %v845_v55  ;;  %v829_v52 = vpop.permute.xlu0 %828 }
 0x172   : > { %v991_v53 = vsel %vm985_vm10, %v974_v6, %v829_v52  ;;  %1571 = vmatmul.mubr.msk.f32.gmra.mrb[4].mxu1 %vm1014_vm11, %v999_v38 }
 0x173   : > { %1559 = vmatmul.mubr.msk.f32.gmra.mrb[4].mxu0 %vm1014_vm11, %v991_v53 }
 0x174   : > { %v692_v41 = vpop.permute.xlu1 %691 }
 0x175   : > { %v676_v59 = vpop.permute.xlu0 %675  ;;  %v950_v32 = vsel %vm934_vm7, %v933_v17, %v692_v41 }
 0x176   : > { %v942_v0 = vsel %vm934_vm7, %v925_v43, %v676_v59 }
 0x178   : > { %v740_v5 = vpop.permute.xlu1 %739 }
 0x179   : > { %v724_v7 = vpop.permute.xlu0 %723  ;;  %v966_v54 = vsel %vm951_vm8, %v949_v26, %v740_v5 }
 0x17a   : > { %v958_v11 = vsel %vm951_vm8, %v941_v33, %v724_v7 }
 0x17c   : > { %v742_v25 = vpop.permute.xlu1 %741 }
 0x17d   : > { %v726_v14 = vpop.permute.xlu0 %725  ;;  %v967_v36 = vsel %vm951_vm8, %v950_v32, %v742_v25 }
 0x17e   : > { %v959_v47 = vsel %vm951_vm8, %v942_v0, %v726_v14 }
 0x180   : > { %v794_v30 = vpop.permute.xlu1 %793 }
 0x181   : > { %v778_v57 = vpop.permute.xlu0 %777  ;;  %v983_v8 = vsel %vm968_vm9, %v966_v54, %v794_v30 }
 0x182   : > { %v975_v12 = vsel %vm968_vm9, %v958_v11, %v778_v57 }
 0x184   : > { %v796_v61 = vpop.permute.xlu1 %795 }
 0x185   : > { %v780_v20 = vpop.permute.xlu0 %779  ;;  %v984_v51 = vsel %vm968_vm9, %v967_v36, %v796_v61 }
 0x186   : > { %v976_v42 = vsel %vm968_vm9, %v959_v47, %v780_v20 }
 0x188   : > { %v847_v28 = vpop.permute.xlu1 %846 }
 0x189   : > { %v1000_v29 = vsel %vm985_vm10, %v983_v8, %v847_v28  ;;  %v831_v46 = vpop.permute.xlu0 %830 }
 0x18a   : > { %v992_v44 = vsel %vm985_vm10, %v975_v12, %v831_v46  ;;  %1573 = vmatprep.mubr.msk.f32.mxu1 %vm1014_vm11, %v1000_v29 }
 0x18b   : > { %1561 = vmatprep.mubr.msk.f32.mxu0 %vm1014_vm11, %v992_v44 }
 0x18c   : > { %v849_v56 = vpop.permute.xlu1 %848 }
 0x18d   : > { %v1001_v49 = vsel %vm985_vm10, %v984_v51, %v849_v56  ;;  %v833_v63 = vpop.permute.xlu0 %832 }
 0x18e   : > { %v993_v1 = vsel %vm985_vm10, %v976_v42, %v833_v63  ;;  %1574 = vmatmul.mubr.msk.f32.gmra.mrb[6].mxu1 %vm1014_vm11, %v1001_v49 }
 0x18f   : > { %1562 = vmatmul.mubr.msk.f32.gmra.mrb[6].mxu0 %vm1014_vm11, %v993_v1 }
 0x1c9   : > { %v1566_v3 = vpop.f32.mrb[0].mxu1 }
 0x1ca   : > { %v1554_v10 = vpop.f32.mrb[0].mxu0  ;;  %v1179_v4 = vadd.f32 %v1566_v3, %v2480_v2  ;;  %v1173_v9 = vpop.f32.mrb[1].mxu1 }
 0x1cb   : > { %v1139_v19 = vadd.f32 %v1554_v10, %v2480_v2  ;;  %v1133_v22 = vpop.f32.mrb[1].mxu0  ;;  %v1174_v23 = vadd.f32 %v2480_v2, %v1173_v9 }
 0x1cc   : > { %v1503_v37 = vmul.f32 -1.442695, %v1179_v4  ;;  %v1134_v39 = vadd.f32 %v2480_v2, %v1133_v22 }
 0x1cd   : > { %v1495_v13 = vmul.f32 -1.442695, %v1139_v19  ;;  %v1502_v16 = vmul.f32 -1.442695, %v1174_v23 }
 0x1ce   : > { %1641 = vpow2.f32 %v1503_v37  ;;  %v1494_v40 = vmul.f32 -1.442695, %v1134_v39 }
 0x1cf   : > { %1643 = vpow2.f32 %v1495_v13 }
 0x1d0   : > { %1645 = vpow2.f32 %v1494_v40 }
 0x1d1   : > { %1647 = vpow2.f32 %v1502_v16 }
 0x1d8   : > { %v1642_v50 = vpop.eup %1641 }
 0x1d9   : > { %v1644_v34 = vpop.eup %1643  ;;  %v1269_v55 = vadd.f32 1.0, %v1642_v50 }
 0x1da   : > { %v1646_v6 = vpop.eup %1645  ;;  %v1261_v38 = vadd.f32 1.0, %v1644_v34 }
 0x1db   : > { %v1648_v52 = vpop.eup %1647  ;;  %1649 = vrcp.f32 %v1269_v55  ;;  %v1260_v53 = vadd.f32 1.0, %v1646_v6 }
 0x1dc   : > { %1651 = vrcp.f32 %v1261_v38  ;;  %v1268_v41 = vadd.f32 1.0, %v1648_v52 }
 0x1dd   : > { %1653 = vrcp.f32 %v1260_v53 }
 0x1de   : > { %1655 = vrcp.f32 %v1268_v41 }
 0x1e5   : > { %v1650_v59 = vpop.eup %1649 }
 0x1e6   : > { %v1652_v5 = vpop.eup %1651  ;;  %v1317_v7 = vmul.f32 %v1650_v59, %v1179_v4 }
 0x1e7   : > { %v1654_v25 = vpop.eup %1653  ;;  %v1309_v14 = vmul.f32 %v1652_v5, %v1139_v19 }
 0x1e8   : > { %v1656_v30 = vpop.eup %1655  ;;  %1333 = vst.msk [vmem:[%s2492_s27 + $0x48] sm:$0xff] %vm866_vm3, %v1317_v7  ;;  %v1308_v57 = vmul.f32 %v1654_v25, %v1134_v39 }
 0x1e9   : > { %1325 = vst.msk [vmem:[%s2492_s27 + $0x8] sm:$0xff] %vm866_vm3, %v1309_v14  ;;  %v1316_v58 = vmul.f32 %v1656_v30, %v1174_v23 }
 0x1ea   : > { %1324 = vst.msk [vmem:[%s2492_s27] sm:$0xff] %vm866_vm3, %v1308_v57 }
 0x1eb   : > { %1332 = vst.msk [vmem:[%s2492_s27 + $0x40] sm:$0xff] %vm866_vm3, %v1316_v58 }
 0x209   : > { %v1557_v61 = vpop.f32.mrb[2].mxu0  ;;  %v1569_v62 = vpop.f32.mrb[2].mxu1 }
 0x20a   : > { %v1149_v24 = vadd.f32 %v1557_v61, %v2480_v2  ;;  %v1189_v20 = vadd.f32 %v1569_v62, %v2480_v2  ;;  %v1143_v60 = vpop.f32.mrb[3].mxu0  ;;  %v1183_v21 = vpop.f32.mrb[3].mxu1 }
 0x20b   : > { %v1144_v45 = vadd.f32 %v2480_v2, %v1143_v60  ;;  %v1184_v26 = vadd.f32 %v2480_v2, %v1183_v21 }
 0x20c   : > { %v1497_v15 = vmul.f32 -1.442695, %v1149_v24  ;;  %v1505_v18 = vmul.f32 -1.442695, %v1189_v20 }
 0x20d   : > { %v1496_v27 = vmul.f32 -1.442695, %v1144_v45  ;;  %v1504_v33 = vmul.f32 -1.442695, %v1184_v26 }
 0x20e   : > { %1657 = vpow2.f32 %v1497_v15 }
 0x20f   : > { %1659 = vpow2.f32 %v1505_v18 }
 0x210   : > { %1661 = vpow2.f32 %v1496_v27 }
 0x211   : > { %1663 = vpow2.f32 %v1504_v33 }
 0x218   : > { %v1658_v54 = vpop.eup %1657 }
 0x219   : > { %v1660_v35 = vpop.eup %1659  ;;  %v1263_v31 = vadd.f32 1.0, %v1658_v54 }
 0x21a   : > { %v1662_v11 = vpop.eup %1661  ;;  %v1271_v8 = vadd.f32 1.0, %v1660_v35 }
 0x21b   : > { %v1664_v28 = vpop.eup %1663  ;;  %1665 = vrcp.f32 %v1263_v31  ;;  %v1262_v48 = vadd.f32 1.0, %v1662_v11 }
 0x21c   : > { %1667 = vrcp.f32 %v1271_v8  ;;  %v1270_v17 = vadd.f32 1.0, %v1664_v28 }
 0x21d   : > { %1669 = vrcp.f32 %v1262_v48 }
 0x21e   : > { %1671 = vrcp.f32 %v1270_v17 }
 0x225   : > { %v1666_v12 = vpop.eup %1665 }
 0x226   : > { %v1668_v29 = vpop.eup %1667  ;;  %v1311_v46 = vmul.f32 %v1666_v12, %v1149_v24 }
 0x227   : > { %v1670_v43 = vpop.eup %1669  ;;  %v1319_v32 = vmul.f32 %v1668_v29, %v1189_v20 }
 0x228   : > { %v1672_v44 = vpop.eup %1671  ;;  %1327 = vst.msk [vmem:[%s2492_s27 + $0x18] sm:$0xff] %vm866_vm3, %v1311_v46  ;;  %v1310_v0 = vmul.f32 %v1670_v43, %v1144_v45 }
 0x229   : > { %1335 = vst.msk [vmem:[%s2492_s27 + $0x58] sm:$0xff] %vm866_vm3, %v1319_v32  ;;  %v1318_v36 = vmul.f32 %v1672_v44, %v1184_v26 }
 0x22a   : > { %1326 = vst.msk [vmem:[%s2492_s27 + $0x10] sm:$0xff] %vm866_vm3, %v1310_v0 }
 0x22b   : > { %1334 = vst.msk [vmem:[%s2492_s27 + $0x50] sm:$0xff] %vm866_vm3, %v1318_v36 }
 0x245   : > { %v1572_v47 = vpop.f32.mrb[4].mxu1 }
 0x246   : > { %v1560_v51 = vpop.f32.mrb[4].mxu0  ;;  %v1199_v56 = vadd.f32 %v1572_v47, %v2480_v2  ;;  %v1193_v42 = vpop.f32.mrb[5].mxu1 }
 0x247   : > { %v1159_v49 = vadd.f32 %v1560_v51, %v2480_v2  ;;  %v1153_v63 = vpop.f32.mrb[5].mxu0  ;;  %v1194_v1 = vadd.f32 %v2480_v2, %v1193_v42 }
 0x248   : > { %v1507_v3 = vmul.f32 -1.442695, %v1199_v56  ;;  %v1154_v10 = vadd.f32 %v2480_v2, %v1153_v63 }
 0x249   : > { %v1499_v4 = vmul.f32 -1.442695, %v1159_v49  ;;  %v1506_v9 = vmul.f32 -1.442695, %v1194_v1 }
 0x24a   : > { %1673 = vpow2.f32 %v1507_v3  ;;  %v1498_v19 = vmul.f32 -1.442695, %v1154_v10 }
 0x24b   : > { %1675 = vpow2.f32 %v1499_v4 }
 0x24c   : > { %1677 = vpow2.f32 %v1498_v19 }
 0x24d   : > { %1679 = vpow2.f32 %v1506_v9 }
 0x254   : > { %v1674_v22 = vpop.eup %1673 }
 0x255   : > { %v1676_v23 = vpop.eup %1675  ;;  %v1273_v37 = vadd.f32 1.0, %v1674_v22 }
 0x256   : > { %v1678_v39 = vpop.eup %1677  ;;  %v1265_v13 = vadd.f32 1.0, %v1676_v23 }
 0x257   : > { %v1680_v16 = vpop.eup %1679  ;;  %1681 = vrcp.f32 %v1273_v37  ;;  %v1264_v40 = vadd.f32 1.0, %v1678_v39 }
 0x258   : > { %1683 = vrcp.f32 %v1265_v13  ;;  %v1272_v50 = vadd.f32 1.0, %v1680_v16 }
 0x259   : > { %1685 = vrcp.f32 %v1264_v40 }
 0x25a   : > { %1687 = vrcp.f32 %v1272_v50 }
 0x261   : > { %v1682_v34 = vpop.eup %1681  ;;  %v1575_v55 = vpop.f32.mrb[6].mxu1 }
 0x262   : > { %v1684_v6 = vpop.eup %1683  ;;  %v1321_v38 = vmul.f32 %v1682_v34, %v1199_v56  ;;  %v1563_v52 = vpop.f32.mrb[6].mxu0  ;;  %v1209_v53 = vadd.f32 %v1575_v55, %v2480_v2 }
 0x263   : > { %v1203_v41 = vpop.f32.mrb[7].mxu1  ;;  %v1686_v59 = vpop.eup %1685  ;;  %v1313_v5 = vmul.f32 %v1684_v6, %v1159_v49  ;;  %v1169_v7 = vadd.f32 %v1563_v52, %v2480_v2 }
 0x264   : > { %v1163_v25 = vpop.f32.mrb[7].mxu0  ;;  %v1204_v14 = vadd.f32 %v2480_v2, %v1203_v41  ;;  %v1688_v30 = vpop.eup %1687  ;;  %1337 = vst.msk [vmem:[%s2492_s27 + $0x68] sm:$0xff] %vm866_vm3, %v1321_v38  ;;  %v1312_v57 = vmul.f32 %v1686_v59, %v1154_v10  ;;  %v1509_v58 = vmul.f32 -1.442695, %v1209_v53 }
 0x265   : > { %v1164_v61 = vadd.f32 %v2480_v2, %v1163_v25  ;;  %1329 = vst.msk [vmem:[%s2492_s27 + $0x28] sm:$0xff] %vm866_vm3, %v1313_v5  ;;  %v1320_v62 = vmul.f32 %v1688_v30, %v1194_v1  ;;  %v1501_v24 = vmul.f32 -1.442695, %v1169_v7 }
 0x266   : > { %v1508_v20 = vmul.f32 -1.442695, %v1204_v14  ;;  %1328 = vst.msk [vmem:[%s2492_s27 + $0x20] sm:$0xff] %vm866_vm3, %v1312_v57  ;;  %1689 = vpow2.f32 %v1509_v58 }
 0x267   : > { %v1500_v60 = vmul.f32 -1.442695, %v1164_v61  ;;  %1336 = vst.msk [vmem:[%s2492_s27 + $0x60] sm:$0xff] %vm866_vm3, %v1320_v62  ;;  %1691 = vpow2.f32 %v1501_v24 }
 0x269   : > { %1693 = vpow2.f32 %v1500_v60 }
 0x26a   : > { %1695 = vpow2.f32 %v1508_v20 }
 0x270   : > { %v1690_v21 = vpop.eup %1689 }
 0x271   : > { %v1692_v45 = vpop.eup %1691  ;;  %v1275_v26 = vadd.f32 1.0, %v1690_v21 }
 0x272   : > { %v1267_v2 = vadd.f32 1.0, %v1692_v45 }
 0x273   : > { %v1694_v15 = vpop.eup %1693  ;;  %1697 = vrcp.f32 %v1275_v26 }
 0x274   : > { %v1696_v18 = vpop.eup %1695  ;;  %v1266_v27 = vadd.f32 1.0, %v1694_v15  ;;  %1699 = vrcp.f32 %v1267_v2 }
 0x275   : > { %v1274_v33 = vadd.f32 1.0, %v1696_v18 }
 0x276   : > { %1701 = vrcp.f32 %v1266_v27 }
 0x277   : > { %1703 = vrcp.f32 %v1274_v33 }
 0x27d   : > { %v1698_v54 = vpop.eup %1697 }
 0x27e   : > { %v1700_v35 = vpop.eup %1699  ;;  %v1323_v31 = vmul.f32 %v1698_v54, %v1209_v53 }
 0x27f   : > { %v1315_v8 = vmul.f32 %v1700_v35, %v1169_v7 }
 0x280   : > { %v1702_v11 = vpop.eup %1701  ;;  %1339 = vst.msk [vmem:[%s2492_s27 + $0x78] sm:$0xff] %vm866_vm3, %v1323_v31 }
 0x281   : > { %v1704_v28 = vpop.eup %1703  ;;  %v1314_v48 = vmul.f32 %v1702_v11, %v1164_v61  ;;  %1331 = vst.msk [vmem:[%s2492_s27 + $0x38] sm:$0xff] %vm866_vm3, %v1315_v8 }
 0x282   : > { %v1322_v17 = vmul.f32 %v1704_v28, %v1204_v14 }
 0x283   : > { %1330 = vst.msk [vmem:[%s2492_s27 + $0x30] sm:$0xff] %vm866_vm3, %v1314_v48 }
 0x284   : > { %1338 = vst.msk [vmem:[%s2492_s27 + $0x70] sm:$0xff] %vm866_vm3, %v1322_v17 }
 0x285 PF: > { %s14_s19 = sadd.s32 1, %s1743_s19   ;;  %s2585_s15 = smov %s1735_s17 }
 0x286   : > { %p11_p9 = scmp.ge.s32.totalorder %s14_s19, 6   ;;  %s2586_s16 = smov %s1739_s18 }
 0x287   : > { %s2587_s17 = smov %s2590_s20  ;;  %s2588_s18 = smov %s2594_s21 }
 0x288   :  { %13 = sbr.rel (!%p11_p9) target bundleno = 3 (0x3), region = 69 }

</bundles_post_ra>
